<compile_context>
chip_gen: v7x
topology: tpu7x:2x2x1
jax: 0.10.0
libtpu: 0.0.40
codegen_flags: <defaults>
</compile_context>

<pallas_src>
import jax
import jax.numpy as jnp
from jax.experimental import pallas as pl
from jax.experimental.pallas import tpu as pltpu


LANE = 128          # lane width (last-dim tile)
SUBLANE_BF16 = 16   # bf16 packs 16 rows per vreg -> batch granularity


def _round_up(n, m):
    return (n + m - 1) // m * m


def _cdiv(a, b):
    return -(-a // b)


def _mlp_kernel(x_ref, w1_ref, b1_ref, w2_ref, b2_ref, w3_ref, b3_ref, o_ref):
    # fc1: bf16 MXU operands (K = raw input_size, no lane padding), f32 accumulate
    h1 = jnp.dot(x_ref[...], w1_ref[...], preferred_element_type=jnp.float32)
    h1 = jnp.maximum(h1 + b1_ref[...], 0.0)
    # dropout(p=0.5) -> identity in eval mode
    # TODO(synk): training-mode dropout would need pltpu.prng_seed/prng_random_bits.

    # fc2 + bias + ReLU (K = N = 128, exact MXU tile)
    h2 = jnp.dot(h1.astype(jnp.bfloat16), w2_ref[...],
                 preferred_element_type=jnp.float32)
    h2 = jnp.maximum(h2 + b2_ref[...], 0.0)
    # dropout(p=0.5) -> identity in eval mode

    # fc3 (no activation); output stays unpadded in the feature dim (d_out lanes)
    h3 = jnp.dot(h2.astype(jnp.bfloat16), w3_ref[...],
                 preferred_element_type=jnp.float32)
    o_ref[...] = (h3 + b3_ref[...]).astype(o_ref.dtype)


def _choose_tiling(B, tm_max):
    """Pick (tile_rows, padded_batch, num_tiles) with at most one sublane group
    of waste per tile, and >=2 tiles (v7x megacore) when B has enough work."""
    num_tiles = max(1, _cdiv(B, tm_max))
    if num_tiles < 2 and B >= 2 * SUBLANE_BF16:
        num_tiles = 2
    tm = _round_up(_cdiv(B, num_tiles), SUBLANE_BF16)
    b_p = num_tiles * tm
    return tm, b_p, num_tiles


def prepare_params(params):
    """One-time padding + bf16 cast of the weights (done outside the forward)."""
    d_in, h1 = params["w1"].shape
    h2 = params["w2"].shape[1]
    d_out = params["w3"].shape[1]
    h1_p = _round_up(h1, LANE)    # 128 -> 128
    h2_p = _round_up(h2, LANE)    # 64  -> 128 (zeros; exact MXU tile, no effect on math)

    def pad2(a, rows, cols, dtype):
        buf = jnp.zeros((rows, cols), dtype)
        return buf.at[: a.shape[0], : a.shape[1]].set(a.astype(dtype))

    return {
        "w1": pad2(params["w1"], d_in, h1_p, jnp.bfloat16),   # (d_in, 128) bf16
        "b1": pad2(params["b1"], 1, h1_p, jnp.float32),       # (1, 128)    f32
        "w2": pad2(params["w2"], h1_p, h2_p, jnp.bfloat16),   # (128, 128)  bf16
        "b2": pad2(params["b2"], 1, h2_p, jnp.float32),       # (1, 128)    f32
        "w3": pad2(params["w3"], h2_p, d_out, jnp.bfloat16),  # (128, d_out) bf16 (out dim unpadded)
        "b3": params["b3"].astype(jnp.float32),               # (1, d_out)  f32
    }


def chatbot_forward(x, prepared, *, tm_max=1024):
    """x: (B, input_size) float32. prepared: output of prepare_params()."""
    w1, b1 = prepared["w1"], prepared["b1"]
    w2, b2 = prepared["w2"], prepared["b2"]
    w3, b3 = prepared["w3"], prepared["b3"]

    B, d_in = x.shape
    assert d_in == w1.shape[0]
    h1_p, h2_p, d_out = w1.shape[1], w2.shape[1], w3.shape[1]

    tm, b_p, num_tiles = _choose_tiling(B, tm_max)

    # bf16 activation stream; only batch padding (no lane padding of x)
    x_bf = x.astype(jnp.bfloat16)
    if b_p != B:
        x_bf = jnp.pad(x_bf, ((0, b_p - B), (0, 0)))

    flops = 2 * b_p * (d_in * h1_p + h1_p * h2_p + h2_p * d_out)
    bytes_accessed = (
        b_p * d_in * 2                                      # x stream (bf16)
        + (w1.size + w2.size + w3.size) * 2                 # weights (bf16)
        + (b1.size + b2.size + b3.size) * 4                 # biases (f32)
        + b_p * d_out * 4                                   # output (f32, unpadded)
    )

    out_padded = pl.pallas_call(
        _mlp_kernel,
        out_shape=jax.ShapeDtypeStruct((b_p, d_out), jnp.float32),
        grid=(num_tiles,),
        in_specs=[
            # activations: one batch tile per grid step (double-buffered by Pallas)
            pl.BlockSpec((tm, d_in), lambda i: (i, 0)),
            # weights / biases: whole-array, resident across all grid steps
            pl.BlockSpec((d_in, h1_p), lambda i: (0, 0)),
            pl.BlockSpec((1, h1_p), lambda i: (0, 0)),
            pl.BlockSpec((h1_p, h2_p), lambda i: (0, 0)),
            pl.BlockSpec((1, h2_p), lambda i: (0, 0)),
            pl.BlockSpec((h2_p, d_out), lambda i: (0, 0)),
            pl.BlockSpec((1, d_out), lambda i: (0, 0)),
        ],
        out_specs=pl.BlockSpec((tm, d_out), lambda i: (i, 0)),
        compiler_params=pltpu.CompilerParams(
            dimension_semantics=("parallel",),
        ),
        cost_estimate=pl.CostEstimate(
            flops=flops, transcendentals=0, bytes_accessed=bytes_accessed
        ),
    )(x_bf, w1, b1, w2, b2, w3, b3)

    # drop batch padding (feature dim is already unpadded)
    return out_padded[:B]


def init_params(key, input_size, output_size):
    """Deterministic init mimicking nn.Linear's U(-1/sqrt(in), 1/sqrt(in)).
    Weights stored as (in, out) = transpose of PyTorch's (out, in)."""
    dims = [(input_size, 128), (128, 64), (64, output_size)]
    params = {}
    for i, (fan_in, fan_out) in enumerate(dims, start=1):
        key, kw, kb = jax.random.split(key, 3)
        bound = 1.0 / jnp.sqrt(fan_in)
        params[f"w{i}"] = jax.random.uniform(
            kw, (fan_in, fan_out), jnp.float32, -bound, bound)
        params[f"b{i}"] = jax.random.uniform(
            kb, (1, fan_out), jnp.float32, -bound, bound)
    return params


if __name__ == "__main__":
    input_size = 32   # bag-of-words vocab size (small synthetic)
    output_size = 8   # number of intent classes (small synthetic)
    batch = 2

    key = jax.random.PRNGKey(0)
    key, kx = jax.random.split(key)
    x = jax.random.normal(kx, (batch, input_size), jnp.float32)
    params = init_params(key, input_size, output_size)
    prepared = prepare_params(params)

    out = chatbot_forward(x, prepared)
    out = jax.block_until_ready(out)
    assert out.shape == (batch, output_size)

    # Reference mirroring the kernel's numerics (bf16 MXU operands, f32 accum).
    def bf(a):
        return a.astype(jnp.bfloat16)

    h = jnp.dot(bf(x), bf(params["w1"]), preferred_element_type=jnp.float32) + params["b1"]
    h = jnp.maximum(h, 0.0)
    h = jnp.dot(bf(h), bf(params["w2"]), preferred_element_type=jnp.float32) + params["b2"]
    h = jnp.maximum(h, 0.0)
    ref_bf16 = jnp.dot(bf(h), bf(params["w3"]), preferred_element_type=jnp.float32) + params["b3"]

    # Full-f32 PyTorch-semantics reference (eval-mode dropout = identity).
    r = jnp.maximum(x @ params["w1"] + params["b1"], 0.0)
    r = jnp.maximum(r @ params["w2"] + params["b2"], 0.0)
    ref_f32 = r @ params["w3"] + params["b3"]

    assert jnp.allclose(out, ref_bf16, atol=2e-3, rtol=2e-3), \
        float(jnp.max(jnp.abs(out - ref_bf16)))
    assert jnp.allclose(out, ref_f32, atol=5e-2, rtol=5e-2), \
        float(jnp.max(jnp.abs(out - ref_f32)))

    print("KERNEL_OK")
</pallas_src>

<mosaic_0001>
module attributes {stable_mosaic.version = 11 : i64} {
  func.func @_mlp_kernel(%arg0: i32, %arg1: memref<16x32xbf16, #tpu.memory_space<vmem>>, %arg2: memref<32x128xbf16, #tpu.memory_space<vmem>>, %arg3: memref<1x128xf32, #tpu.memory_space<vmem>>, %arg4: memref<128x128xbf16, #tpu.memory_space<vmem>>, %arg5: memref<1x128xf32, #tpu.memory_space<vmem>>, %arg6: memref<128x8xbf16, #tpu.memory_space<vmem>>, %arg7: memref<1x8xf32, #tpu.memory_space<vmem>>, %arg8: memref<16x8xf32, #tpu.memory_space<vmem>>) attributes {dimension_semantics = [#tpu.dimension_semantics<parallel>], iteration_bounds = array<i64: 1>, scalar_prefetch = 0 : i64, scratch_operands = 0 : i64, tpu.core_type = #tpu.core_type<tc>, window_params = [{transform_indices = @transform_0, window_bounds = array<i64: 16, 32>}, {pipeline_mode = #tpu.pipeline_mode<synchronous>, transform_indices = @transform_1, window_bounds = array<i64: 32, 128>}, {pipeline_mode = #tpu.pipeline_mode<synchronous>, transform_indices = @transform_2, window_bounds = array<i64: 1, 128>}, {pipeline_mode = #tpu.pipeline_mode<synchronous>, transform_indices = @transform_3, window_bounds = array<i64: 128, 128>}, {pipeline_mode = #tpu.pipeline_mode<synchronous>, transform_indices = @transform_4, window_bounds = array<i64: 1, 128>}, {pipeline_mode = #tpu.pipeline_mode<synchronous>, transform_indices = @transform_5, window_bounds = array<i64: 128, 8>}, {pipeline_mode = #tpu.pipeline_mode<synchronous>, transform_indices = @transform_6, window_bounds = array<i64: 1, 8>}, {transform_indices = @transform_7, window_bounds = array<i64: 16, 8>}]} {
    %c0 = arith.constant 0 : index
    %c0_0 = arith.constant 0 : index
    %0 = vector.load %arg1[%c0, %c0_0] : memref<16x32xbf16, #tpu.memory_space<vmem>>, vector<16x32xbf16>
    %c0_1 = arith.constant 0 : index
    %c0_2 = arith.constant 0 : index
    %1 = vector.load %arg2[%c0_1, %c0_2] : memref<32x128xbf16, #tpu.memory_space<vmem>>, vector<32x128xbf16>
    %cst = arith.constant dense<0.000000e+00> : vector<16x128xf32>
    %2 = tpu.matmul %0, %1, %cst {dimension_numbers = #tpu.dot_dimension_numbers<[1], [0], [0], [1], [0, 0, 1, 1], [], []>} : vector<16x32xbf16>, vector<32x128xbf16>, vector<16x128xf32> -> vector<16x128xf32>
    %c0_3 = arith.constant 0 : index
    %c0_4 = arith.constant 0 : index
    %3 = vector.load %arg3[%c0_3, %c0_4] : memref<1x128xf32, #tpu.memory_space<vmem>>, vector<1x128xf32>
    %4 = vector.broadcast %3 : vector<1x128xf32> to vector<16x128xf32>
    %5 = arith.addf %2, %4 : vector<16x128xf32>
    %cst_5 = arith.constant 0.000000e+00 : f32
    %6 = vector.broadcast %cst_5 : f32 to vector<16x128xf32>
    %7 = arith.maximumf %5, %6 : vector<16x128xf32>
    %8 = arith.truncf %7 : vector<16x128xf32> to vector<16x128xbf16>
    %c0_6 = arith.constant 0 : index
    %c0_7 = arith.constant 0 : index
    %9 = vector.load %arg4[%c0_6, %c0_7] : memref<128x128xbf16, #tpu.memory_space<vmem>>, vector<128x128xbf16>
    %cst_8 = arith.constant dense<0.000000e+00> : vector<16x128xf32>
    %10 = tpu.matmul %8, %9, %cst_8 {dimension_numbers = #tpu.dot_dimension_numbers<[1], [0], [0], [1], [0, 0, 1, 1], [], []>} : vector<16x128xbf16>, vector<128x128xbf16>, vector<16x128xf32> -> vector<16x128xf32>
    %c0_9 = arith.constant 0 : index
    %c0_10 = arith.constant 0 : index
    %11 = vector.load %arg5[%c0_9, %c0_10] : memref<1x128xf32, #tpu.memory_space<vmem>>, vector<1x128xf32>
    %12 = vector.broadcast %11 : vector<1x128xf32> to vector<16x128xf32>
    %13 = arith.addf %10, %12 : vector<16x128xf32>
    %cst_11 = arith.constant 0.000000e+00 : f32
    %14 = vector.broadcast %cst_11 : f32 to vector<16x128xf32>
    %15 = arith.maximumf %13, %14 : vector<16x128xf32>
    %16 = arith.truncf %15 : vector<16x128xf32> to vector<16x128xbf16>
    %c0_12 = arith.constant 0 : index
    %c0_13 = arith.constant 0 : index
    %17 = vector.load %arg6[%c0_12, %c0_13] : memref<128x8xbf16, #tpu.memory_space<vmem>>, vector<128x8xbf16>
    %cst_14 = arith.constant dense<0.000000e+00> : vector<16x8xf32>
    %18 = tpu.matmul %16, %17, %cst_14 {dimension_numbers = #tpu.dot_dimension_numbers<[1], [0], [0], [1], [0, 0, 1, 1], [], []>} : vector<16x128xbf16>, vector<128x8xbf16>, vector<16x8xf32> -> vector<16x8xf32>
    %c0_15 = arith.constant 0 : index
    %c0_16 = arith.constant 0 : index
    %19 = vector.load %arg7[%c0_15, %c0_16] : memref<1x8xf32, #tpu.memory_space<vmem>>, vector<1x8xf32>
    %20 = vector.broadcast %19 : vector<1x8xf32> to vector<16x8xf32>
    %21 = arith.addf %18, %20 : vector<16x8xf32>
    %c0_17 = arith.constant 0 : index
    %c0_18 = arith.constant 0 : index
    %22 = vector.load %arg8[%c0_17, %c0_18] : memref<16x8xf32, #tpu.memory_space<vmem>>, vector<16x8xf32>
    tpu.vector_store %arg8[%c0_17, %c0_18], %21 {strides = array<i32>} : memref<16x8xf32, #tpu.memory_space<vmem>>, vector<16x8xf32>,
    return
  }
  func.func @transform_0(%arg0: i32) -> (i32, i32) {
    %c0_i32 = arith.constant 0 : i32
    %c0_i32_0 = arith.constant 0 : i32
    return %arg0, %c0_i32 : i32, i32
  }
  func.func @transform_1(%arg0: i32) -> (i32, i32) {
    %c0_i32 = arith.constant 0 : i32
    %c0_i32_0 = arith.constant 0 : i32
    %c0_i32_1 = arith.constant 0 : i32
    return %c0_i32, %c0_i32_0 : i32, i32
  }
  func.func @transform_2(%arg0: i32) -> (i32, i32) {
    %c0_i32 = arith.constant 0 : i32
    %c0_i32_0 = arith.constant 0 : i32
    %c0_i32_1 = arith.constant 0 : i32
    return %c0_i32, %c0_i32_0 : i32, i32
  }
  func.func @transform_3(%arg0: i32) -> (i32, i32) {
    %c0_i32 = arith.constant 0 : i32
    %c0_i32_0 = arith.constant 0 : i32
    %c0_i32_1 = arith.constant 0 : i32
    return %c0_i32, %c0_i32_0 : i32, i32
  }
  func.func @transform_4(%arg0: i32) -> (i32, i32) {
    %c0_i32 = arith.constant 0 : i32
    %c0_i32_0 = arith.constant 0 : i32
    %c0_i32_1 = arith.constant 0 : i32
    return %c0_i32, %c0_i32_0 : i32, i32
  }
  func.func @transform_5(%arg0: i32) -> (i32, i32) {
    %c0_i32 = arith.constant 0 : i32
    %c0_i32_0 = arith.constant 0 : i32
    %c0_i32_1 = arith.constant 0 : i32
    return %c0_i32, %c0_i32_0 : i32, i32
  }
  func.func @transform_6(%arg0: i32) -> (i32, i32) {
    %c0_i32 = arith.constant 0 : i32
    %c0_i32_0 = arith.constant 0 : i32
    %c0_i32_1 = arith.constant 0 : i32
    return %c0_i32, %c0_i32_0 : i32, i32
  }
  func.func @transform_7(%arg0: i32) -> (i32, i32) {
    %c0_i32 = arith.constant 0 : i32
    %c0_i32_0 = arith.constant 0 : i32
    return %arg0, %c0_i32 : i32, i32
  }
}

</mosaic_0001>

<bundles_post_ra>
// kernel: tpu_custom_call.1
= control target key start
LH: loop header
LB: loop body
LE: loop exit
PB: predicated region body
PF: predicated region fallthrough
CT: control target
= control target key end

     0   :  { %12 = vsyncpa [#allocation3], 0  ;;  %s494_s24 = smov [#allocation2]   ;;  %s641_s0 = inlined_call_operand.vmem [shape: bf16[16,32], index: 0, kind: input, shape index: {}]   ;;  %s642_s1 = inlined_call_operand.hbm [shape: bf16[32,128], index: 1, kind: input, shape index: {}]   ;;  %s643_s2 = inlined_call_operand.vmem [shape: f32[1,128], index: 2, kind: input, shape index: {}]   ;;  %s644_s3 = inlined_call_operand.vmem [shape: bf16[128,128], index: 3, kind: input, shape index: {}]   ;;  %s645_s4 = inlined_call_operand.vmem [shape: f32[1,128], index: 4, kind: input, shape index: {}]   ;;  %s646_s5 = inlined_call_operand.vmem [shape: bf16[128,8], index: 5, kind: input, shape index: {}]   ;;  %s647_s6 = inlined_call_operand.vmem [shape: f32[1,8], index: 6, kind: input, shape index: {}]   ;;  %s648_s7 = inlined_call_operand.vmem [shape: f32[16,8], index: 7, kind: output, shape index: {}]  }
   0x1   :  { %s20_s25 = sshll.u32 %s494_s24, 4  ;;  %s470_s28 = scalar_lea.hbm %s642_s1, 256  ;;  %s21_s25 = int_to_ptr.vmem [resolvable:$true] %s20_s25 }
   0x2   :  { %p471_p0 = scmp.ne.s32.totalorder %s642_s1, %s470_s28  ;;  %p474_p1 = scmp.lt.u32.totalorder %s470_s28, %s642_s1 }
   0x4   :  { %p476_p2 = pnand %p474_p1, %p471_p0 }
   0x6   :  { %479 = shalt.err (!%p476_p2)
}
   0x7   :  { %s480_s10 = scalar_lea.vmem %s21_s25, 256  ;;  %p485_p4 = scmp.lt.s32.totalorder %s21_s25, %s21_s25 }
   0x8   :  { %p481_p3 = scmp.ne.s32.totalorder %s21_s25, %s480_s10  ;;  %p486_p5 = scmp.lt.s32.totalorder %s480_s10, %s480_s10 }
   0xa   :  { %p487_p6 = por %p486_p5, %p485_p4 }
   0xc   :  { %p488_p7 = pnand %p487_p6, %p481_p3 }
   0xe   :  { %491 = shalt.err (!%p488_p7)
}
   0xf   :  { %s495_s11 = smov 64   ;;  %s496_s12 = smov 4  }
  0x10   :  { %26 = dma.hbm_to_vmem [thread:$0]  %s642_s1, 256, %s21_s25, [#allocation3], %s495_s11, %s495_s11, %s496_s12  }
  0x11   :  { %492 = dma.done.wait [#allocation3], 256  }
  0x12   :  { %493 = vsyncadd [#allocation3], 4294967040  ;;  %v497_v0 = vmov 0.0   ;;  %vm498_vm0 = vmmov 0   ;;  %v451_v1 = vld [vmem:[#allocation2] sm:$0xff]   ;;  %v452_v2 = vld [vmem:[#allocation2 + $0x8] sm:$0xff]  }
  0x13   :  { %398 = vmatprep.subr.bf16.mxu0 %v497_v0  ;;  %402 = vmatprep.mubr.msk.bf16.mxu0 %vm498_vm0, %v497_v0  ;;  %v454_v3 = vld [vmem:[%s644_s3] sm:$0xff]   ;;  %v455_v5 = vld [vmem:[%s644_s3 + $0x8] sm:$0xff]   ;;  %vm71_vm1 = vcmask 261120   ;;  %v456_v6 = vld [vmem:[%s644_s3 + $0x10] sm:$0xff]   ;;  %vm346_vm2 = vcmask 64512  }
  0x14   :  { %406 = vmatprep.subr.bf16.mxu1 %v497_v0  ;;  %422 = vmatprep.mubr.msk.bf16.mxu1 %vm498_vm0, %v497_v0  ;;  %v453_v4 = vld [vmem:[%s641_s0] sm:$0xff]   ;;  %v457_v7 = vld [vmem:[%s644_s3 + $0x18] sm:$0xff]   ;;  %v459_v9 = vld [vmem:[%s644_s3 + $0x28] sm:$0xff]  }
  0x15   :  { %399 = vmatpush3.bf16.msra.mxu0 %v451_v1  ;;  %407 = vmatpush3.bf16.msra.mxu1 %v454_v3  ;;  %v458_v8 = vld [vmem:[%s644_s3 + $0x20] sm:$0xff]   ;;  %v460_v10 = vld [vmem:[%s644_s3 + $0x30] sm:$0xff]   ;;  %v461_v11 = vld [vmem:[%s644_s3 + $0x38] sm:$0xff]  }
  0x16   :  { %400 = vmatprep.subr.bf16.mxu0 %v497_v0  ;;  %408 = vmatprep.subr.bf16.mxu1 %v497_v0  ;;  %v462_v12 = vld [vmem:[%s646_s5] sm:$0xff]   ;;  %v463_v13 = vld [vmem:[%s646_s5 + $0x8] sm:$0xff]   ;;  %v464_v14 = vld [vmem:[%s646_s5 + $0x10] sm:$0xff]  }
  0x17   :  { %v465_v15 = vld [vmem:[%s646_s5 + $0x18] sm:$0xff]   ;;  %v466_v16 = vld [vmem:[%s646_s5 + $0x20] sm:$0xff]   ;;  %v467_v17 = vld [vmem:[%s646_s5 + $0x28] sm:$0xff]  }
  0x18   :  { %v354_v18 = vld [vmem:[%s643_s2] ss:$0 sm:$0xff]  ;;  %v468_v28 = vld [vmem:[%s646_s5 + $0x30] sm:$0xff]   ;;  %v469_v29 = vld [vmem:[%s646_s5 + $0x38] sm:$0xff]  }
  0x19   :  { %401 = vmatpush3.bf16.msra.mxu0 %v452_v2  ;;  %409 = vmatpush3.bf16.msra.mxu1 %v455_v5  ;;  %v359_v30 = vld [vmem:[%s645_s4] ss:$0 sm:$0xff] }
  0x1a   :  { %426 = vmatprep.subr.bf16.mxu0 %v497_v0  ;;  %410 = vmatprep.subr.bf16.mxu1 %v497_v0  ;;  %v368_v40 = vld [vmem:[%s647_s6] ss:$0 sm:$0xff] }
  0x1c   :  { %403 = vmatmul.mubr.msk.bf16.vlgmr.msra.gmra.mrb[0].mxu0 %vm71_vm1, %v453_v4 }
  0x1d   :  { %442 = vmatprep.mubr.msk.bf16.mxu0 %vm498_vm0, %v497_v0  ;;  %411 = vmatpush3.bf16.msra.mxu1 %v456_v6 }
  0x1e   :  { %412 = vmatprep.subr.bf16.mxu1 %v497_v0  ;;  %427 = vmatpush3.bf16.msra.mxu0 %v462_v12 }
  0x1f   :  { %428 = vmatprep.subr.bf16.mxu0 %v497_v0 }
  0x21   :  { %413 = vmatpush3.bf16.msra.mxu1 %v457_v7 }
  0x22   :  { %414 = vmatprep.subr.bf16.mxu1 %v497_v0  ;;  %429 = vmatpush3.bf16.msra.mxu0 %v463_v13 }
  0x23   :  { %430 = vmatprep.subr.bf16.mxu0 %v497_v0 }
  0x25   :  { %415 = vmatpush3.bf16.msra.mxu1 %v458_v8 }
  0x26   :  { %416 = vmatprep.subr.bf16.mxu1 %v497_v0  ;;  %431 = vmatpush3.bf16.msra.mxu0 %v464_v14 }
  0x27   :  { %432 = vmatprep.subr.bf16.mxu0 %v497_v0 }
  0x29   :  { %417 = vmatpush3.bf16.msra.mxu1 %v459_v9 }
  0x2a   :  { %418 = vmatprep.subr.bf16.mxu1 %v497_v0  ;;  %433 = vmatpush3.bf16.msra.mxu0 %v465_v15 }
  0x2b   :  { %434 = vmatprep.subr.bf16.mxu0 %v497_v0 }
  0x2d   :  { %419 = vmatpush3.bf16.msra.mxu1 %v460_v10 }
  0x2e   :  { %420 = vmatprep.subr.bf16.mxu1 %v497_v0  ;;  %435 = vmatpush3.bf16.msra.mxu0 %v466_v16 }
  0x2f   :  { %436 = vmatprep.subr.bf16.mxu0 %v497_v0 }
  0x31   :  { %421 = vmatpush3.bf16.msra.mxu1 %v461_v11 }
  0x32   :  { %437 = vmatpush3.bf16.msra.mxu0 %v467_v17 }
  0x33   :  { %438 = vmatprep.subr.bf16.mxu0 %v497_v0 }
  0x36   :  { %439 = vmatpush3.bf16.msra.mxu0 %v468_v28 }
  0x37   :  { %440 = vmatprep.subr.bf16.mxu0 %v497_v0 }
  0x3a   :  { %441 = vmatpush3.bf16.msra.mxu0 %v469_v29 }
  0xef   :  { %v109_v19 = vpop.f32.mrb[0].mxu0 }
  0xf0   :  { %v110_v20 = vadd.f32 %v354_v18, %v109_v19  ;;  %v404_v21 = vpop.f32.mrb[1].mxu0 }
  0xf1   :  { %v112_v22 = vpop.f32.mrb[2].mxu0 }
  0xf2   :  { %v113_v23 = vadd.f32 %v354_v18, %v112_v22  ;;  %v405_v24 = vpop.f32.mrb[3].mxu0  ;;  %v116_v25 = vmax.f32 %v110_v20, 0.0 }
  0xf4   :  { %v117_v26 = vmax.f32 %v113_v23, 0.0 }
  0xf6   :  { %v118_v27 = vpack.c.bf16 %v117_v26, %v116_v25 }
  0xf8   :  { %423 = vmatmul.mubr.bf16.vlgmr.msra.gmra.mrb[0].mxu1 %v118_v27 }
 0x1cb   :  { %v224_v31 = vpop.f32.mrb[0].mxu1 }
 0x1cc   :  { %v225_v32 = vadd.f32 %v359_v30, %v224_v31  ;;  %v424_v33 = vpop.f32.mrb[1].mxu1 }
 0x1cd   :  { %v227_v34 = vpop.f32.mrb[2].mxu1 }
 0x1ce   :  { %v228_v35 = vadd.f32 %v359_v30, %v227_v34  ;;  %v425_v36 = vpop.f32.mrb[3].mxu1  ;;  %v231_v37 = vmax.f32 %v225_v32, 0.0 }
 0x1d0   :  { %v232_v38 = vmax.f32 %v228_v35, 0.0 }
 0x1d2   :  { %v233_v39 = vpack.c.bf16 %v232_v38, %v231_v37 }
 0x1d4   :  { %443 = vmatmul.mubr.bf16.vlgmr.msra.gmra.mrb[4].mxu0 %v233_v39 }
 0x2a7   :  { %v339_v41 = vpop.f32.mrb[4].mxu0 }
 0x2a8   :  { %v340_v42 = vadd.f32 %v368_v40, %v339_v41  ;;  %v444_v43 = vpop.f32.mrb[5].mxu0 }
 0x2a9   :  { %v342_v44 = vpop.f32.mrb[6].mxu0 }
 0x2aa   :  { %347 = vst.msk [vmem:[%s648_s7] sm:$0xff] %vm346_vm2, %v340_v42  ;;  %v343_v45 = vadd.f32 %v368_v40, %v342_v44  ;;  %v445_v46 = vpop.f32.mrb[7].mxu0 }
 0x2ac   :  { %348 = vst.msk [vmem:[%s648_s7 + $0x8] sm:$0xff] %vm346_vm2, %v343_v45 }
 0x2ad   :  { %353 = vsyncpa [#allocation3], 1 }

</bundles_post_ra>
